<compile_context>
chip_gen: v7x
topology: tpu7x:2x2x1
jax: 0.10.0
libtpu: 0.0.40
codegen_flags: <defaults>
</compile_context>

<pallas_src>
import numpy as np
import jax
import jax.numpy as jnp
from jax.experimental import pallas as pl
from jax.experimental.pallas import tpu as pltpu


def _round_up(a, b):
    return ((a + b - 1) // b) * b


# ----------------------------- Pallas kernel -------------------------------

def _lino_kernel(x_ref, w_emb_ref, b_emb_ref,
                 a_li_ref, b_li_ref,
                 w1_ref, b1_ref, w2_ref, b2_ref,
                 wl_ref, bl_ref, wn_ref, bn_ref,
                 out_ref):
    """LiNo forward for one tile of flattened (batch, variate) rows.

    x_ref:   [TM, L]      float32  (rows = flattened (b, n); time on lanes)
    out_ref: [TM, P_pad]  float32  (lane-dense, 128-multiple store)
    weights: bf16 (MXU operands); biases: float32.
    """
    tm = x_ref.shape[0]
    p_pad = out_ref.shape[1]
    n_layers = a_li_ref.shape[0]

    x = x_ref[...]                                             # [TM, L] f32

    # ---- RevIN: per-row stats over the time (lane) axis, f32 ----
    means = jnp.mean(x, axis=1, keepdims=True)                 # [TM, 1]
    xc = x - means
    var = jnp.mean(xc * xc, axis=1, keepdims=True)             # unbiased=False
    stdev = jnp.sqrt(var + 1e-5)
    x_norm = xc / stdev                                        # [TM, L] f32

    # ---- DataEmbedding_inverted: Linear(L -> D); bf16 in, f32 accumulate ----
    res = jnp.dot(x_norm.astype(jnp.bfloat16), w_emb_ref[...],
                  preferred_element_type=jnp.float32) + b_emb_ref[...]  # [TM,D]
    # dropout -> identity (eval mode)

    acc = jnp.zeros((tm, p_pad), jnp.float32)                  # sum of heads

    for l in range(n_layers):                                  # static unroll
        # Li: learnable moving-average extraction (banded D x D matmul)
        li = jnp.dot(res.astype(jnp.bfloat16), a_li_ref[l],
                     preferred_element_type=jnp.float32) + b_li_ref[l]  # [TM,D]
        r = res - li
        # No: nonlinear extraction (2-layer GELU MLP); GELU kept in f32
        h = jnp.dot(r.astype(jnp.bfloat16), w1_ref[l],
                    preferred_element_type=jnp.float32) + b1_ref[l]
        h = jax.nn.gelu(h)
        no = jnp.dot(h.astype(jnp.bfloat16), w2_ref[l],
                     preferred_element_type=jnp.float32) + b2_ref[l]
        res = r - no
        # prediction heads (pred = sum over all linear + nonlinear heads)
        acc = acc + jnp.dot(li.astype(jnp.bfloat16), wl_ref[l],
                            preferred_element_type=jnp.float32) + bl_ref[l]
        acc = acc + jnp.dot(no.astype(jnp.bfloat16), wn_ref[l],
                            preferred_element_type=jnp.float32) + bn_ref[l]

    # ---- RevIN reverse, f32, lane-dense [TM, P_pad] store ----
    out_ref[...] = acc * stdev + means


# ------------------------------- wrapper ------------------------------------

def lino_forward(x_enc, params, row_tile=256):
    """x_enc: [B, L, N] (PyTorch convention). Returns [B, pred_len, N]."""
    B, L, N = x_enc.shape
    D = params["w_emb"].shape[1]
    P = params["w_lin"].shape[2]
    Dff = params["w1"].shape[2]
    layers = params["a_li"].shape[0]

    # Flatten (B, N) -> one row axis; single HBM copy does transpose+reshape.
    R = B * N
    x_rows = jnp.transpose(x_enc, (0, 2, 1)).reshape(R, L).astype(jnp.float32)

    TM = _round_up(min(row_tile, R), 8)            # rows per grid step
    R_pad = _round_up(R, TM)
    if R_pad != R:
        x_rows = jnp.pad(x_rows, ((0, R_pad - R), (0, 0)))   # zero rows: benign

    # Pad pred_len to a multiple of 128 -> lane-dense, unmasked output stores
    # and efficient writeback DMA.  Padded columns sliced off below.
    P_pad = _round_up(P, 128)
    dP = P_pad - P

    # bf16 weights for the MXU; biases stay f32.
    bf = lambda a: a.astype(jnp.bfloat16)
    f32 = lambda a: a.astype(jnp.float32)
    w_emb, a_li = bf(params["w_emb"]), bf(params["a_li"])
    w1, w2 = bf(params["w1"]), bf(params["w2"])
    w_lin = bf(jnp.pad(params["w_lin"], ((0, 0), (0, 0), (0, dP))))
    w_non = bf(jnp.pad(params["w_non"], ((0, 0), (0, 0), (0, dP))))
    b_emb, b_li = f32(params["b_emb"]), f32(params["b_li"])
    b1, b2 = f32(params["b1"]), f32(params["b2"])
    b_lin = f32(jnp.pad(params["b_lin"], ((0, 0), (0, 0), (0, dP))))
    b_non = f32(jnp.pad(params["b_non"], ((0, 0), (0, 0), (0, dP))))

    def full(shape):
        return pl.BlockSpec(shape, lambda r, _n=len(shape): (0,) * _n)

    # Explicit VMEM budget: weights (x2 for default double-buffering) +
    # double-buffered IO tiles + working set, clamped to [32, 48] MiB so it
    # stays under v7x's 64 MiB physical VMEM while raising the scoped default.
    weight_bytes = 2 * (L * D + layers * (D * D + D * Dff + Dff * D + 2 * D * P_pad)) \
        + 4 * (D + layers * (1 + Dff + D + 2 * P_pad))
    io_bytes = 2 * 4 * (TM * L + TM * P_pad)
    work_bytes = 4 * TM * (L + 4 * D + Dff + 2 * P_pad)
    est = 2 * weight_bytes + io_bytes + 2 * work_bytes
    vmem_limit = int(min(max(est + (16 << 20), 32 << 20), 48 << 20))

    out_rows = pl.pallas_call(
        _lino_kernel,
        out_shape=jax.ShapeDtypeStruct((R_pad, P_pad), jnp.float32),
        grid=(R_pad // TM,),
        in_specs=[
            pl.BlockSpec((TM, L), lambda r: (r, 0)),
            full((L, D)), full((1, D)),
            full((layers, D, D)), full((layers, 1, 1)),
            full((layers, D, Dff)), full((layers, 1, Dff)),
            full((layers, Dff, D)), full((layers, 1, D)),
            full((layers, D, P_pad)), full((layers, 1, P_pad)),
            full((layers, D, P_pad)), full((layers, 1, P_pad)),
        ],
        out_specs=pl.BlockSpec((TM, P_pad), lambda r: (r, 0)),
        compiler_params=pltpu.CompilerParams(
            dimension_semantics=("parallel",),
            vmem_limit_bytes=vmem_limit),
    )(x_rows,
      w_emb, b_emb,
      a_li, b_li,
      w1, b1, w2, b2,
      w_lin, b_lin, w_non, b_non)

    out = out_rows[:R, :P].reshape(B, N, P)
    return jnp.transpose(out, (0, 2, 1))                       # [B, P, N]


# --------------------------- parameter helpers -------------------------------

def _ma_conv_matrix(kernel_w, d_model):
    """Replicate-padded 1D conv (kernel_w) over the last axis as a [D, D] matmul."""
    K = kernel_w.shape[0]
    c = K // 2
    A = np.zeros((d_model, d_model), np.float32)
    for k in range(K):
        for d in range(d_model):
            src = min(max(d + k - c, 0), d_model - 1)
            A[src, d] += float(kernel_w[k])
    return A


def init_params(key, seq_len, pred_len, d_model, d_ff, layers, li_kernel_size=5):
    ks = iter(jax.random.split(key, 4 + 8 * layers))

    def linear(fan_in, shape):
        bound = 1.0 / np.sqrt(fan_in)
        return jax.random.uniform(next(ks), shape, jnp.float32, -bound, bound)

    w_emb = linear(seq_len, (seq_len, d_model))
    b_emb = linear(seq_len, (1, d_model))

    # Li: learnable moving-average kernel (Gaussian init, normalized), bias 0.
    c = li_kernel_size // 2
    g = np.exp(-(((np.arange(li_kernel_size) - c) / 2.0) ** 2)).astype(np.float32)
    g = g / g.sum()
    a_li = np.stack([_ma_conv_matrix(g, d_model) for _ in range(layers)], 0)
    b_li = np.zeros((layers, 1, 1), np.float32)

    def stack(fn):
        return jnp.stack([fn() for _ in range(layers)], 0)

    w1 = stack(lambda: linear(d_model, (d_model, d_ff)))
    b1 = stack(lambda: linear(d_model, (1, d_ff)))
    w2 = stack(lambda: linear(d_ff, (d_ff, d_model)))
    b2 = stack(lambda: linear(d_ff, (1, d_model)))
    w_lin = stack(lambda: linear(d_model, (d_model, pred_len)))
    b_lin = stack(lambda: linear(d_model, (1, pred_len)))
    w_non = stack(lambda: linear(d_model, (d_model, pred_len)))
    b_non = stack(lambda: linear(d_model, (1, pred_len)))

    return dict(w_emb=w_emb, b_emb=b_emb,
                a_li=jnp.asarray(a_li), b_li=jnp.asarray(b_li),
                w1=w1, b1=b1, w2=w2, b2=b2,
                w_lin=w_lin, b_lin=b_lin, w_non=w_non, b_non=b_non)


# ------------------------ pure-JAX reference (check) -------------------------

def lino_reference(x_enc, params):
    hp = jax.lax.Precision.HIGHEST
    x = jnp.transpose(x_enc, (0, 2, 1))                        # [B, N, L]
    means = jnp.mean(x, axis=2, keepdims=True)
    xc = x - means
    stdev = jnp.sqrt(jnp.mean(xc * xc, axis=2, keepdims=True) + 1e-5)
    xn = xc / stdev
    res = jnp.einsum("bnl,ld->bnd", xn, params["w_emb"], precision=hp) + params["b_emb"]
    acc = 0.0
    for l in range(params["a_li"].shape[0]):
        li = jnp.einsum("bnd,de->bne", res, params["a_li"][l], precision=hp) + params["b_li"][l]
        r = res - li
        h = jax.nn.gelu(jnp.einsum("bnd,df->bnf", r, params["w1"][l], precision=hp) + params["b1"][l])
        no = jnp.einsum("bnf,fd->bnd", h, params["w2"][l], precision=hp) + params["b2"][l]
        res = r - no
        acc = acc + jnp.einsum("bnd,dp->bnp", li, params["w_lin"][l], precision=hp) + params["b_lin"][l]
        acc = acc + jnp.einsum("bnd,dp->bnp", no, params["w_non"][l], precision=hp) + params["b_non"][l]
    out = acc * stdev + means
    return jnp.transpose(out, (0, 2, 1))                       # [B, P, N]


# ---------------------------------- main -------------------------------------

if __name__ == "__main__":
    # small config: batch=2, seq_len=16, enc_in(N)=4, d_model=32, pred_len=8, layers=2
    B, L, N = 2, 16, 4
    P, D, Dff, LAYERS = 8, 32, 32, 2

    key = jax.random.PRNGKey(0)
    kx, kp = jax.random.split(key)
    x_enc = jax.random.normal(kx, (B, L, N), jnp.float32)
    params = init_params(kp, L, P, D, Dff, LAYERS)

    out = jax.jit(lino_forward)(x_enc, params)
    out = jax.block_until_ready(out)

    ref = lino_reference(x_enc, params)
    # bf16 MXU operands with f32 accumulation -> compare at 2e-2.
    np.testing.assert_allclose(np.asarray(out), np.asarray(ref), rtol=2e-2, atol=2e-2)
    assert out.shape == (B, P, N)
    print("KERNEL_OK")
</pallas_src>

<mosaic_0001>
module attributes {stable_mosaic.version = 11 : i64} {
  func.func @_lino_kernel(%arg0: i32, %arg1: memref<8x16xf32, #tpu.memory_space<vmem>>, %arg2: memref<16x32xbf16, #tpu.memory_space<vmem>>, %arg3: memref<1x32xf32, #tpu.memory_space<vmem>>, %arg4: memref<2x32x32xbf16, #tpu.memory_space<vmem>>, %arg5: memref<2x1x1xf32, #tpu.memory_space<vmem>>, %arg6: memref<2x32x32xbf16, #tpu.memory_space<vmem>>, %arg7: memref<2x1x32xf32, #tpu.memory_space<vmem>>, %arg8: memref<2x32x32xbf16, #tpu.memory_space<vmem>>, %arg9: memref<2x1x32xf32, #tpu.memory_space<vmem>>, %arg10: memref<2x32x128xbf16, #tpu.memory_space<vmem>>, %arg11: memref<2x1x128xf32, #tpu.memory_space<vmem>>, %arg12: memref<2x32x128xbf16, #tpu.memory_space<vmem>>, %arg13: memref<2x1x128xf32, #tpu.memory_space<vmem>>, %arg14: memref<8x128xf32, #tpu.memory_space<vmem>>) attributes {dimension_semantics = [#tpu.dimension_semantics<parallel>], iteration_bounds = array<i64: 1>, scalar_prefetch = 0 : i64, scratch_operands = 0 : i64, tpu.core_type = #tpu.core_type<tc>, window_params = [{transform_indices = @transform_0, window_bounds = array<i64: 8, 16>}, {pipeline_mode = #tpu.pipeline_mode<synchronous>, transform_indices = @transform_1, window_bounds = array<i64: 16, 32>}, {pipeline_mode = #tpu.pipeline_mode<synchronous>, transform_indices = @transform_2, window_bounds = array<i64: 1, 32>}, {pipeline_mode = #tpu.pipeline_mode<synchronous>, transform_indices = @transform_3, window_bounds = array<i64: 2, 32, 32>}, {pipeline_mode = #tpu.pipeline_mode<synchronous>, transform_indices = @transform_4, window_bounds = array<i64: 2, 1, 1>}, {pipeline_mode = #tpu.pipeline_mode<synchronous>, transform_indices = @transform_5, window_bounds = array<i64: 2, 32, 32>}, {pipeline_mode = #tpu.pipeline_mode<synchronous>, transform_indices = @transform_6, window_bounds = array<i64: 2, 1, 32>}, {pipeline_mode = #tpu.pipeline_mode<synchronous>, transform_indices = @transform_7, window_bounds = array<i64: 2, 32, 32>}, {pipeline_mode = #tpu.pipeline_mode<synchronous>, transform_indices = @transform_8, window_bounds = array<i64: 2, 1, 32>}, {pipeline_mode = #tpu.pipeline_mode<synchronous>, transform_indices = @transform_9, window_bounds = array<i64: 2, 32, 128>}, {pipeline_mode = #tpu.pipeline_mode<synchronous>, transform_indices = @transform_10, window_bounds = array<i64: 2, 1, 128>}, {pipeline_mode = #tpu.pipeline_mode<synchronous>, transform_indices = @transform_11, window_bounds = array<i64: 2, 32, 128>}, {pipeline_mode = #tpu.pipeline_mode<synchronous>, transform_indices = @transform_12, window_bounds = array<i64: 2, 1, 128>}, {transform_indices = @transform_13, window_bounds = array<i64: 8, 128>}]} {
    %c0 = arith.constant 0 : index
    %c0_0 = arith.constant 0 : index
    %0 = vector.load %arg1[%c0, %c0_0] : memref<8x16xf32, #tpu.memory_space<vmem>>, vector<8x16xf32>
    %cst = arith.constant dense<0.000000e+00> : vector<8xf32>
    %1 = vector.multi_reduction <add>, %0, %cst [1] : vector<8x16xf32> to vector<8xf32>
    %2 = vector.shape_cast %1 : vector<8xf32> to vector<8x1xf32>
    %cst_1 = arith.constant 1.600000e+01 : f32
    %3 = vector.broadcast %cst_1 : f32 to vector<8x1xf32>
    %4 = arith.divf %2, %3 : vector<8x1xf32>
    %5 = vector.broadcast %4 : vector<8x1xf32> to vector<8x16xf32>
    %6 = arith.subf %0, %5 : vector<8x16xf32>
    %7 = arith.mulf %6, %6 : vector<8x16xf32>
    %cst_2 = arith.constant dense<0.000000e+00> : vector<8xf32>
    %8 = vector.multi_reduction <add>, %7, %cst_2 [1] : vector<8x16xf32> to vector<8xf32>
    %9 = vector.shape_cast %8 : vector<8xf32> to vector<8x1xf32>
    %cst_3 = arith.constant 1.600000e+01 : f32
    %10 = vector.broadcast %cst_3 : f32 to vector<8x1xf32>
    %11 = arith.divf %9, %10 : vector<8x1xf32>
    %cst_4 = arith.constant 9.99999974E-6 : f32
    %12 = vector.broadcast %cst_4 : f32 to vector<8x1xf32>
    %13 = arith.addf %11, %12 : vector<8x1xf32>
    %14 = math.sqrt %13 : vector<8x1xf32>
    %15 = vector.broadcast %14 : vector<8x1xf32> to vector<8x16xf32>
    %16 = arith.divf %6, %15 : vector<8x16xf32>
    %17 = arith.truncf %16 : vector<8x16xf32> to vector<8x16xbf16>
    %c0_5 = arith.constant 0 : index
    %c0_6 = arith.constant 0 : index
    %18 = vector.load %arg2[%c0_5, %c0_6] : memref<16x32xbf16, #tpu.memory_space<vmem>>, vector<16x32xbf16>
    %cst_7 = arith.constant dense<0.000000e+00> : vector<8x32xf32>
    %19 = tpu.matmul %17, %18, %cst_7 {dimension_numbers = #tpu.dot_dimension_numbers<[1], [0], [0], [1], [0, 0, 1, 1], [], []>} : vector<8x16xbf16>, vector<16x32xbf16>, vector<8x32xf32> -> vector<8x32xf32>
    %c0_8 = arith.constant 0 : index
    %c0_9 = arith.constant 0 : index
    %20 = vector.load %arg3[%c0_8, %c0_9] : memref<1x32xf32, #tpu.memory_space<vmem>>, vector<1x32xf32>
    %21 = vector.broadcast %20 : vector<1x32xf32> to vector<8x32xf32>
    %22 = arith.addf %19, %21 : vector<8x32xf32>
    %cst_10 = arith.constant 0.000000e+00 : f32
    %23 = vector.broadcast %cst_10 : f32 to vector<8x128xf32>
    %24 = arith.truncf %22 : vector<8x32xf32> to vector<8x32xbf16>
    %c0_11 = arith.constant 0 : index
    %c0_12 = arith.constant 0 : index
    %c0_13 = arith.constant 0 : index
    %25 = vector.load %arg4[%c0_11, %c0_12, %c0_13] : memref<2x32x32xbf16, #tpu.memory_space<vmem>>, vector<1x32x32xbf16>
    %26 = vector.shape_cast %25 : vector<1x32x32xbf16> to vector<32x32xbf16>
    %cst_14 = arith.constant dense<0.000000e+00> : vector<8x32xf32>
    %27 = tpu.matmul %24, %26, %cst_14 {dimension_numbers = #tpu.dot_dimension_numbers<[1], [0], [0], [1], [0, 0, 1, 1], [], []>} : vector<8x32xbf16>, vector<32x32xbf16>, vector<8x32xf32> -> vector<8x32xf32>
    %c0_15 = arith.constant 0 : index
    %c0_16 = arith.constant 0 : index
    %c0_17 = arith.constant 0 : index
    %28 = vector.load %arg5[%c0_15, %c0_16, %c0_17] : memref<2x1x1xf32, #tpu.memory_space<vmem>>, vector<1x1x1xf32>
    %29 = vector.shape_cast %28 : vector<1x1x1xf32> to vector<1x1xf32>
    %30 = vector.broadcast %29 : vector<1x1xf32> to vector<8x32xf32>
    %31 = arith.addf %27, %30 : vector<8x32xf32>
    %32 = arith.subf %22, %31 : vector<8x32xf32>
    %33 = arith.truncf %32 : vector<8x32xf32> to vector<8x32xbf16>
    %c0_18 = arith.constant 0 : index
    %c0_19 = arith.constant 0 : index
    %c0_20 = arith.constant 0 : index
    %34 = vector.load %arg6[%c0_18, %c0_19, %c0_20] : memref<2x32x32xbf16, #tpu.memory_space<vmem>>, vector<1x32x32xbf16>
    %35 = vector.shape_cast %34 : vector<1x32x32xbf16> to vector<32x32xbf16>
    %cst_21 = arith.constant dense<0.000000e+00> : vector<8x32xf32>
    %36 = tpu.matmul %33, %35, %cst_21 {dimension_numbers = #tpu.dot_dimension_numbers<[1], [0], [0], [1], [0, 0, 1, 1], [], []>} : vector<8x32xbf16>, vector<32x32xbf16>, vector<8x32xf32> -> vector<8x32xf32>
    %c0_22 = arith.constant 0 : index
    %c0_23 = arith.constant 0 : index
    %c0_24 = arith.constant 0 : index
    %37 = vector.load %arg7[%c0_22, %c0_23, %c0_24] : memref<2x1x32xf32, #tpu.memory_space<vmem>>, vector<1x1x32xf32>
    %38 = vector.shape_cast %37 : vector<1x1x32xf32> to vector<1x32xf32>
    %39 = vector.broadcast %38 : vector<1x32xf32> to vector<8x32xf32>
    %40 = arith.addf %36, %39 : vector<8x32xf32>
    %41 = arith.mulf %40, %40 : vector<8x32xf32>
    %42 = arith.mulf %40, %41 : vector<8x32xf32>
    %cst_25 = arith.constant 4.471500e-02 : f32
    %43 = vector.broadcast %cst_25 : f32 to vector<8x32xf32>
    %44 = arith.mulf %43, %42 : vector<8x32xf32>
    %45 = arith.addf %40, %44 : vector<8x32xf32>
    %cst_26 = arith.constant 0.797884583 : f32
    %46 = vector.broadcast %cst_26 : f32 to vector<8x32xf32>
    %47 = arith.mulf %46, %45 : vector<8x32xf32>
    %48 = math.tanh %47 : vector<8x32xf32>
    %cst_27 = arith.constant 1.000000e+00 : f32
    %49 = vector.broadcast %cst_27 : f32 to vector<8x32xf32>
    %50 = arith.addf %49, %48 : vector<8x32xf32>
    %cst_28 = arith.constant 5.000000e-01 : f32
    %51 = vector.broadcast %cst_28 : f32 to vector<8x32xf32>
    %52 = arith.mulf %51, %50 : vector<8x32xf32>
    %53 = arith.mulf %40, %52 : vector<8x32xf32>
    %54 = arith.truncf %53 : vector<8x32xf32> to vector<8x32xbf16>
    %c0_29 = arith.constant 0 : index
    %c0_30 = arith.constant 0 : index
    %c0_31 = arith.constant 0 : index
    %55 = vector.load %arg8[%c0_29, %c0_30, %c0_31] : memref<2x32x32xbf16, #tpu.memory_space<vmem>>, vector<1x32x32xbf16>
    %56 = vector.shape_cast %55 : vector<1x32x32xbf16> to vector<32x32xbf16>
    %cst_32 = arith.constant dense<0.000000e+00> : vector<8x32xf32>
    %57 = tpu.matmul %54, %56, %cst_32 {dimension_numbers = #tpu.dot_dimension_numbers<[1], [0], [0], [1], [0, 0, 1, 1], [], []>} : vector<8x32xbf16>, vector<32x32xbf16>, vector<8x32xf32> -> vector<8x32xf32>
    %c0_33 = arith.constant 0 : index
    %c0_34 = arith.constant 0 : index
    %c0_35 = arith.constant 0 : index
    %58 = vector.load %arg9[%c0_33, %c0_34, %c0_35] : memref<2x1x32xf32, #tpu.memory_space<vmem>>, vector<1x1x32xf32>
    %59 = vector.shape_cast %58 : vector<1x1x32xf32> to vector<1x32xf32>
    %60 = vector.broadcast %59 : vector<1x32xf32> to vector<8x32xf32>
    %61 = arith.addf %57, %60 : vector<8x32xf32>
    %62 = arith.subf %32, %61 : vector<8x32xf32>
    %63 = arith.truncf %31 : vector<8x32xf32> to vector<8x32xbf16>
    %c0_36 = arith.constant 0 : index
    %c0_37 = arith.constant 0 : index
    %c0_38 = arith.constant 0 : index
    %64 = vector.load %arg10[%c0_36, %c0_37, %c0_38] : memref<2x32x128xbf16, #tpu.memory_space<vmem>>, vector<1x32x128xbf16>
    %65 = vector.shape_cast %64 : vector<1x32x128xbf16> to vector<32x128xbf16>
    %cst_39 = arith.constant dense<0.000000e+00> : vector<8x128xf32>
    %66 = tpu.matmul %63, %65, %cst_39 {dimension_numbers = #tpu.dot_dimension_numbers<[1], [0], [0], [1], [0, 0, 1, 1], [], []>} : vector<8x32xbf16>, vector<32x128xbf16>, vector<8x128xf32> -> vector<8x128xf32>
    %67 = arith.addf %23, %66 : vector<8x128xf32>
    %c0_40 = arith.constant 0 : index
    %c0_41 = arith.constant 0 : index
    %c0_42 = arith.constant 0 : index
    %68 = vector.load %arg11[%c0_40, %c0_41, %c0_42] : memref<2x1x128xf32, #tpu.memory_space<vmem>>, vector<1x1x128xf32>
    %69 = vector.shape_cast %68 : vector<1x1x128xf32> to vector<1x128xf32>
    %70 = vector.broadcast %69 : vector<1x128xf32> to vector<8x128xf32>
    %71 = arith.addf %67, %70 : vector<8x128xf32>
    %72 = arith.truncf %61 : vector<8x32xf32> to vector<8x32xbf16>
    %c0_43 = arith.constant 0 : index
    %c0_44 = arith.constant 0 : index
    %c0_45 = arith.constant 0 : index
    %73 = vector.load %arg12[%c0_43, %c0_44, %c0_45] : memref<2x32x128xbf16, #tpu.memory_space<vmem>>, vector<1x32x128xbf16>
    %74 = vector.shape_cast %73 : vector<1x32x128xbf16> to vector<32x128xbf16>
    %cst_46 = arith.constant dense<0.000000e+00> : vector<8x128xf32>
    %75 = tpu.matmul %72, %74, %cst_46 {dimension_numbers = #tpu.dot_dimension_numbers<[1], [0], [0], [1], [0, 0, 1, 1], [], []>} : vector<8x32xbf16>, vector<32x128xbf16>, vector<8x128xf32> -> vector<8x128xf32>
    %76 = arith.addf %71, %75 : vector<8x128xf32>
    %c0_47 = arith.constant 0 : index
    %c0_48 = arith.constant 0 : index
    %c0_49 = arith.constant 0 : index
    %77 = vector.load %arg13[%c0_47, %c0_48, %c0_49] : memref<2x1x128xf32, #tpu.memory_space<vmem>>, vector<1x1x128xf32>
    %78 = vector.shape_cast %77 : vector<1x1x128xf32> to vector<1x128xf32>
    %79 = vector.broadcast %78 : vector<1x128xf32> to vector<8x128xf32>
    %80 = arith.addf %76, %79 : vector<8x128xf32>
    %81 = arith.truncf %62 : vector<8x32xf32> to vector<8x32xbf16>
    %c1 = arith.constant 1 : index
    %c0_50 = arith.constant 0 : index
    %c0_51 = arith.constant 0 : index
    %82 = vector.load %arg4[%c1, %c0_50, %c0_51] : memref<2x32x32xbf16, #tpu.memory_space<vmem>>, vector<1x32x32xbf16>
    %83 = vector.shape_cast %82 : vector<1x32x32xbf16> to vector<32x32xbf16>
    %cst_52 = arith.constant dense<0.000000e+00> : vector<8x32xf32>
    %84 = tpu.matmul %81, %83, %cst_52 {dimension_numbers = #tpu.dot_dimension_numbers<[1], [0], [0], [1], [0, 0, 1, 1], [], []>} : vector<8x32xbf16>, vector<32x32xbf16>, vector<8x32xf32> -> vector<8x32xf32>
    %c1_53 = arith.constant 1 : index
    %c0_54 = arith.constant 0 : index
    %c0_55 = arith.constant 0 : index
    %85 = vector.load %arg5[%c1_53, %c0_54, %c0_55] : memref<2x1x1xf32, #tpu.memory_space<vmem>>, vector<1x1x1xf32>
    %86 = vector.shape_cast %85 : vector<1x1x1xf32> to vector<1x1xf32>
    %87 = vector.broadcast %86 : vector<1x1xf32> to vector<8x32xf32>
    %88 = arith.addf %84, %87 : vector<8x32xf32>
    %89 = arith.subf %62, %88 : vector<8x32xf32>
    %90 = arith.truncf %89 : vector<8x32xf32> to vector<8x32xbf16>
    %c1_56 = arith.constant 1 : index
    %c0_57 = arith.constant 0 : index
    %c0_58 = arith.constant 0 : index
    %91 = vector.load %arg6[%c1_56, %c0_57, %c0_58] : memref<2x32x32xbf16, #tpu.memory_space<vmem>>, vector<1x32x32xbf16>
    %92 = vector.shape_cast %91 : vector<1x32x32xbf16> to vector<32x32xbf16>
    %cst_59 = arith.constant dense<0.000000e+00> : vector<8x32xf32>
    %93 = tpu.matmul %90, %92, %cst_59 {dimension_numbers = #tpu.dot_dimension_numbers<[1], [0], [0], [1], [0, 0, 1, 1], [], []>} : vector<8x32xbf16>, vector<32x32xbf16>, vector<8x32xf32> -> vector<8x32xf32>
    %c1_60 = arith.constant 1 : index
    %c0_61 = arith.constant 0 : index
    %c0_62 = arith.constant 0 : index
    %94 = vector.load %arg7[%c1_60, %c0_61, %c0_62] : memref<2x1x32xf32, #tpu.memory_space<vmem>>, vector<1x1x32xf32>
    %95 = vector.shape_cast %94 : vector<1x1x32xf32> to vector<1x32xf32>
    %96 = vector.broadcast %95 : vector<1x32xf32> to vector<8x32xf32>
    %97 = arith.addf %93, %96 : vector<8x32xf32>
    %98 = arith.mulf %97, %97 : vector<8x32xf32>
    %99 = arith.mulf %97, %98 : vector<8x32xf32>
    %cst_63 = arith.constant 4.471500e-02 : f32
    %100 = vector.broadcast %cst_63 : f32 to vector<8x32xf32>
    %101 = arith.mulf %100, %99 : vector<8x32xf32>
    %102 = arith.addf %97, %101 : vector<8x32xf32>
    %cst_64 = arith.constant 0.797884583 : f32
    %103 = vector.broadcast %cst_64 : f32 to vector<8x32xf32>
    %104 = arith.mulf %103, %102 : vector<8x32xf32>
    %105 = math.tanh %104 : vector<8x32xf32>
    %cst_65 = arith.constant 1.000000e+00 : f32
    %106 = vector.broadcast %cst_65 : f32 to vector<8x32xf32>
    %107 = arith.addf %106, %105 : vector<8x32xf32>
    %cst_66 = arith.constant 5.000000e-01 : f32
    %108 = vector.broadcast %cst_66 : f32 to vector<8x32xf32>
    %109 = arith.mulf %108, %107 : vector<8x32xf32>
    %110 = arith.mulf %97, %109 : vector<8x32xf32>
    %111 = arith.truncf %110 : vector<8x32xf32> to vector<8x32xbf16>
    %c1_67 = arith.constant 1 : index
    %c0_68 = arith.constant 0 : index
    %c0_69 = arith.constant 0 : index
    %112 = vector.load %arg8[%c1_67, %c0_68, %c0_69] : memref<2x32x32xbf16, #tpu.memory_space<vmem>>, vector<1x32x32xbf16>
    %113 = vector.shape_cast %112 : vector<1x32x32xbf16> to vector<32x32xbf16>
    %cst_70 = arith.constant dense<0.000000e+00> : vector<8x32xf32>
    %114 = tpu.matmul %111, %113, %cst_70 {dimension_numbers = #tpu.dot_dimension_numbers<[1], [0], [0], [1], [0, 0, 1, 1], [], []>} : vector<8x32xbf16>, vector<32x32xbf16>, vector<8x32xf32> -> vector<8x32xf32>
    %c1_71 = arith.constant 1 : index
    %c0_72 = arith.constant 0 : index
    %c0_73 = arith.constant 0 : index
    %115 = vector.load %arg9[%c1_71, %c0_72, %c0_73] : memref<2x1x32xf32, #tpu.memory_space<vmem>>, vector<1x1x32xf32>
    %116 = vector.shape_cast %115 : vector<1x1x32xf32> to vector<1x32xf32>
    %117 = vector.broadcast %116 : vector<1x32xf32> to vector<8x32xf32>
    %118 = arith.addf %114, %117 : vector<8x32xf32>
    %119 = arith.truncf %88 : vector<8x32xf32> to vector<8x32xbf16>
    %c1_74 = arith.constant 1 : index
    %c0_75 = arith.constant 0 : index
    %c0_76 = arith.constant 0 : index
    %120 = vector.load %arg10[%c1_74, %c0_75, %c0_76] : memref<2x32x128xbf16, #tpu.memory_space<vmem>>, vector<1x32x128xbf16>
    %121 = vector.shape_cast %120 : vector<1x32x128xbf16> to vector<32x128xbf16>
    %cst_77 = arith.constant dense<0.000000e+00> : vector<8x128xf32>
    %122 = tpu.matmul %119, %121, %cst_77 {dimension_numbers = #tpu.dot_dimension_numbers<[1], [0], [0], [1], [0, 0, 1, 1], [], []>} : vector<8x32xbf16>, vector<32x128xbf16>, vector<8x128xf32> -> vector<8x128xf32>
    %123 = arith.addf %80, %122 : vector<8x128xf32>
    %c1_78 = arith.constant 1 : index
    %c0_79 = arith.constant 0 : index
    %c0_80 = arith.constant 0 : index
    %124 = vector.load %arg11[%c1_78, %c0_79, %c0_80] : memref<2x1x128xf32, #tpu.memory_space<vmem>>, vector<1x1x128xf32>
    %125 = vector.shape_cast %124 : vector<1x1x128xf32> to vector<1x128xf32>
    %126 = vector.broadcast %125 : vector<1x128xf32> to vector<8x128xf32>
    %127 = arith.addf %123, %126 : vector<8x128xf32>
    %128 = arith.truncf %118 : vector<8x32xf32> to vector<8x32xbf16>
    %c1_81 = arith.constant 1 : index
    %c0_82 = arith.constant 0 : index
    %c0_83 = arith.constant 0 : index
    %129 = vector.load %arg12[%c1_81, %c0_82, %c0_83] : memref<2x32x128xbf16, #tpu.memory_space<vmem>>, vector<1x32x128xbf16>
    %130 = vector.shape_cast %129 : vector<1x32x128xbf16> to vector<32x128xbf16>
    %cst_84 = arith.constant dense<0.000000e+00> : vector<8x128xf32>
    %131 = tpu.matmul %128, %130, %cst_84 {dimension_numbers = #tpu.dot_dimension_numbers<[1], [0], [0], [1], [0, 0, 1, 1], [], []>} : vector<8x32xbf16>, vector<32x128xbf16>, vector<8x128xf32> -> vector<8x128xf32>
    %132 = arith.addf %127, %131 : vector<8x128xf32>
    %c1_85 = arith.constant 1 : index
    %c0_86 = arith.constant 0 : index
    %c0_87 = arith.constant 0 : index
    %133 = vector.load %arg13[%c1_85, %c0_86, %c0_87] : memref<2x1x128xf32, #tpu.memory_space<vmem>>, vector<1x1x128xf32>
    %134 = vector.shape_cast %133 : vector<1x1x128xf32> to vector<1x128xf32>
    %135 = vector.broadcast %134 : vector<1x128xf32> to vector<8x128xf32>
    %136 = arith.addf %132, %135 : vector<8x128xf32>
    %137 = vector.broadcast %14 : vector<8x1xf32> to vector<8x128xf32>
    %138 = arith.mulf %136, %137 : vector<8x128xf32>
    %139 = vector.broadcast %4 : vector<8x1xf32> to vector<8x128xf32>
    %140 = arith.addf %138, %139 : vector<8x128xf32>
    %c0_88 = arith.constant 0 : index
    %c0_89 = arith.constant 0 : index
    %141 = vector.load %arg14[%c0_88, %c0_89] : memref<8x128xf32, #tpu.memory_space<vmem>>, vector<8x128xf32>
    tpu.vector_store %arg14[%c0_88, %c0_89], %140 {strides = array<i32>} : memref<8x128xf32, #tpu.memory_space<vmem>>, vector<8x128xf32>,
    return
  }
  func.func @transform_0(%arg0: i32) -> (i32, i32) {
    %c0_i32 = arith.constant 0 : i32
    %c0_i32_0 = arith.constant 0 : i32
    return %arg0, %c0_i32 : i32, i32
  }
  func.func @transform_1(%arg0: i32) -> (i32, i32) {
    %c0_i32 = arith.constant 0 : i32
    %c0_i32_0 = arith.constant 0 : i32
    %c0_i32_1 = arith.constant 0 : i32
    return %c0_i32, %c0_i32_0 : i32, i32
  }
  func.func @transform_2(%arg0: i32) -> (i32, i32) {
    %c0_i32 = arith.constant 0 : i32
    %c0_i32_0 = arith.constant 0 : i32
    %c0_i32_1 = arith.constant 0 : i32
    return %c0_i32, %c0_i32_0 : i32, i32
  }
  func.func @transform_3(%arg0: i32) -> (i32, i32, i32) {
    %c0_i32 = arith.constant 0 : i32
    %c0_i32_0 = arith.constant 0 : i32
    %c0_i32_1 = arith.constant 0 : i32
    %c0_i32_2 = arith.constant 0 : i32
    return %c0_i32, %c0_i32_0, %c0_i32_1 : i32, i32, i32
  }
  func.func @transform_4(%arg0: i32) -> (i32, i32, i32) {
    %c0_i32 = arith.constant 0 : i32
    %c0_i32_0 = arith.constant 0 : i32
    %c0_i32_1 = arith.constant 0 : i32
    %c0_i32_2 = arith.constant 0 : i32
    return %c0_i32, %c0_i32_0, %c0_i32_1 : i32, i32, i32
  }
  func.func @transform_5(%arg0: i32) -> (i32, i32, i32) {
    %c0_i32 = arith.constant 0 : i32
    %c0_i32_0 = arith.constant 0 : i32
    %c0_i32_1 = arith.constant 0 : i32
    %c0_i32_2 = arith.constant 0 : i32
    return %c0_i32, %c0_i32_0, %c0_i32_1 : i32, i32, i32
  }
  func.func @transform_6(%arg0: i32) -> (i32, i32, i32) {
    %c0_i32 = arith.constant 0 : i32
    %c0_i32_0 = arith.constant 0 : i32
    %c0_i32_1 = arith.constant 0 : i32
    %c0_i32_2 = arith.constant 0 : i32
    return %c0_i32, %c0_i32_0, %c0_i32_1 : i32, i32, i32
  }
  func.func @transform_7(%arg0: i32) -> (i32, i32, i32) {
    %c0_i32 = arith.constant 0 : i32
    %c0_i32_0 = arith.constant 0 : i32
    %c0_i32_1 = arith.constant 0 : i32
    %c0_i32_2 = arith.constant 0 : i32
    return %c0_i32, %c0_i32_0, %c0_i32_1 : i32, i32, i32
  }
  func.func @transform_8(%arg0: i32) -> (i32, i32, i32) {
    %c0_i32 = arith.constant 0 : i32
    %c0_i32_0 = arith.constant 0 : i32
    %c0_i32_1 = arith.constant 0 : i32
    %c0_i32_2 = arith.constant 0 : i32
    return %c0_i32, %c0_i32_0, %c0_i32_1 : i32, i32, i32
  }
  func.func @transform_9(%arg0: i32) -> (i32, i32, i32) {
    %c0_i32 = arith.constant 0 : i32
    %c0_i32_0 = arith.constant 0 : i32
    %c0_i32_1 = arith.constant 0 : i32
    %c0_i32_2 = arith.constant 0 : i32
    return %c0_i32, %c0_i32_0, %c0_i32_1 : i32, i32, i32
  }
  func.func @transform_10(%arg0: i32) -> (i32, i32, i32) {
    %c0_i32 = arith.constant 0 : i32
    %c0_i32_0 = arith.constant 0 : i32
    %c0_i32_1 = arith.constant 0 : i32
    %c0_i32_2 = arith.constant 0 : i32
    return %c0_i32, %c0_i32_0, %c0_i32_1 : i32, i32, i32
  }
  func.func @transform_11(%arg0: i32) -> (i32, i32, i32) {
    %c0_i32 = arith.constant 0 : i32
    %c0_i32_0 = arith.constant 0 : i32
    %c0_i32_1 = arith.constant 0 : i32
    %c0_i32_2 = arith.constant 0 : i32
    return %c0_i32, %c0_i32_0, %c0_i32_1 : i32, i32, i32
  }
  func.func @transform_12(%arg0: i32) -> (i32, i32, i32) {
    %c0_i32 = arith.constant 0 : i32
    %c0_i32_0 = arith.constant 0 : i32
    %c0_i32_1 = arith.constant 0 : i32
    %c0_i32_2 = arith.constant 0 : i32
    return %c0_i32, %c0_i32_0, %c0_i32_1 : i32, i32, i32
  }
  func.func @transform_13(%arg0: i32) -> (i32, i32) {
    %c0_i32 = arith.constant 0 : i32
    %c0_i32_0 = arith.constant 0 : i32
    return %arg0, %c0_i32 : i32, i32
  }
}

</mosaic_0001>

<bundles_post_ra>
// kernel: lino_forward.1
= control target key start
LH: loop header
LB: loop body
LE: loop exit
PB: predicated region body
PF: predicated region fallthrough
CT: control target
= control target key end

     0   :  { %vm47_vm0 = vcmask 130048   ;;  %s1353_s0 = inlined_call_operand.vmem [shape: f32[8,16], index: 0, kind: input, shape index: {}]   ;;  %s1354_s1 = inlined_call_operand.vmem [shape: bf16[16,32], index: 1, kind: input, shape index: {}]   ;;  %s1355_s2 = inlined_call_operand.vmem [shape: f32[1,32], index: 2, kind: input, shape index: {}]   ;;  %s1356_s3 = inlined_call_operand.vmem [shape: bf16[2,32,32], index: 3, kind: input, shape index: {}]   ;;  %s1357_s4 = inlined_call_operand.vmem [shape: f32[2,1,1], index: 4, kind: input, shape index: {}]   ;;  %s1358_s5 = inlined_call_operand.vmem [shape: bf16[2,32,32], index: 5, kind: input, shape index: {}]   ;;  %s1359_s6 = inlined_call_operand.vmem [shape: f32[2,1,32], index: 6, kind: input, shape index: {}]   ;;  %s1360_s7 = inlined_call_operand.vmem [shape: bf16[2,32,32], index: 7, kind: input, shape index: {}]   ;;  %s1361_s8 = inlined_call_operand.vmem [shape: f32[2,1,32], index: 8, kind: input, shape index: {}]   ;;  %s1362_s9 = inlined_call_operand.vmem [shape: bf16[2,32,128], index: 9, kind: input, shape index: {}]   ;;  %s1363_s10 = inlined_call_operand.vmem [shape: f32[2,1,128], index: 10, kind: input, shape index: {}]   ;;  %s1364_s11 = inlined_call_operand.vmem [shape: bf16[2,32,128], index: 11, kind: input, shape index: {}]   ;;  %s1365_s12 = inlined_call_operand.vmem [shape: f32[2,1,128], index: 12, kind: input, shape index: {}]   ;;  %s1366_s13 = inlined_call_operand.hbm [shape: f32[8,128], index: 13, kind: output, shape index: {}]  }
   0x1   :  { %v46_v0 = vld [vmem:[%s1353_s0] sm:$0xff] }
   0x2   :  { %v48_v1 = vsel %vm47_vm0, %v46_v0, 0.0 }
   0x3   :  { %49 = vadd.xlane.f32.xlu0 %v48_v1 }
   0x4   :  { %18 = vsyncpa [#allocation3], 0  ;;  %v1051_v7 = vld [vmem:[%s1354_s1] sm:$0xff]   ;;  %v1104_v8 = vmov 0.0   ;;  %vm1105_vm1 = vmmov 0   ;;  %v1053_v21 = vld [vmem:[%s1356_s3 + $0x8] sm:$0xff]  }
   0x5   :  { %959 = vmatprep.subr.bf16.mxu0 %v1104_v8  ;;  %961 = vmatprep.mubr.msk.bf16.mxu0 %vm1105_vm1, %v1104_v8  ;;  %v1052_v9 = vld [vmem:[%s1356_s3] sm:$0xff]   ;;  %v1106_v23 = vmov 0   ;;  %vm155_vm4 = vcmask 261120   ;;  %v1055_v33 = vld [vmem:[%s1358_s5 + $0x8] sm:$0xff]   ;;  %v1061_v47 = vld [vmem:[%s1356_s3 + $0x10] sm:$0xff]  }
   0x6   :  { %960 = vmatpush3.bf16.msra.mxu0 %v1051_v7  ;;  %965 = vmatprep.subr.bf16.mxu1 %v1104_v8  ;;  %v862_v22 = vld [vmem:[%s1357_s4] ss:$0 sm:$0xff]  ;;  %v887_v25 = vld [vmem:[%s1357_s4 + $0x1] ss:$0 sm:$0xff]  ;;  %v1057_v43 = vld [vmem:[%s1362_s9 + $0x8] sm:$0xff]  }
   0x7   :  { %969 = vmatprep.mubr.msk.bf16.mxu1 %vm1105_vm1, %v1104_v8  ;;  %973 = vmatprep.subr.bf16.mxu0 %v1104_v8  ;;  %v1054_v24 = vld [vmem:[%s1358_s5] sm:$0xff]   ;;  %v1059_v46 = vld [vmem:[%s1360_s7 + $0x8] sm:$0xff]   ;;  %v1063_v7 = vld [vmem:[%s1356_s3 + $0x18] sm:$0xff]  }
   0x8   :  { %966 = vmatpush3.bf16.msra.mxu1 %v1052_v9  ;;  %1049 = vset.pattern.permute.xlu1 %v1106_v23  ;;  %v859_v26 = vld [vmem:[%s1355_s2] ss:$0 sm:$0xff] }
   0x9   :  { %967 = vmatprep.subr.bf16.mxu1 %v1104_v8  ;;  %1050 = vset.pattern.permute.xlu0 %v1106_v23  ;;  %v1056_v41 = vld [vmem:[%s1362_s9] sm:$0xff]  }
   0xa   :  { %140 = vperm.xlu1 %1049, %v862_v22   ;;  %v1058_v45 = vld [vmem:[%s1360_s7] sm:$0xff]  }
   0xb   :  { %v866_v48 = vld [vmem:[%s1359_s6] ss:$0 sm:$0xff] }
   0xc   :  { %968 = vmatpush3.bf16.msra.mxu1 %v1053_v21  ;;  %v870_v9 = vld [vmem:[%s1361_s8] ss:$0 sm:$0xff] }
   0xd   :  { %981 = vmatprep.subr.bf16.mxu1 %v1104_v8  ;;  %v874_v21 = vld [vmem:[%s1363_s10] ss:$0 sm:$0xff] }
   0xe   :  { %494 = vperm.xlu1 %1049, %v887_v25  }
  0x89   :  { %v141_v34 = vpop.permute.xlu1 %140 }
  0x90   :  { %v50_v2 = vpop.xlane.xlu0 %49 }
  0x91   :  { %v1182_v3 = vmul.f32 0.0625, %v50_v2 }
  0x93   :  { %v53_v4 = vsub.f32 %v46_v0, %v1182_v3 }
  0x95   :  { %v54_v5 = vmul.f32 %v53_v4, %v53_v4 }
  0x97   :  { %v55_v6 = vsel %vm47_vm0, %v54_v5, 0.0 }
  0x98   :  { %56 = vadd.xlane.f32.xlu0 %v55_v6  ;;  %v1062_v6 = vld [vmem:[%s1364_s11 + $0x8] sm:$0xff]  }
 0x125   :  { %v57_v10 = vpop.xlane.xlu0 %56 }
 0x126   :  { %v58_v11 = vmul.f32 0.0625, %v57_v10 }
 0x128   :  { %v59_v12 = vadd.f32 1e-05, %v58_v11 }
 0x12a   :  { %1072 = vrsqrt.f32 %v59_v12  ;;  %vm62_vm2 = vcmp.eq.f32.partialorder %v59_v12, inf  ;;  %v65_v15 = vand.u32 2147483648, %v59_v12  ;;  %vm64_vm3 = vcmp.eq.f32.partialorder %v59_v12, 0.0 }
 0x134   :  { %v1073_v13 = vpop.eup %1072 }
 0x135   :  { %v61_v14 = vmul.f32 %v1073_v13, %v59_v12 }
 0x137   :  { %v63_v16 = vsel %vm62_vm2, %v59_v12, %v61_v14 }
 0x138   :  { %v1200_v17 = vsel %vm64_vm3, %v65_v15, %v63_v16 }
 0x139   :  { %1074 = vrcp.f32 %v1200_v17 }
 0x143   :  { %v1075_v18 = vpop.eup %1074 }
 0x144   :  { %v68_v19 = vmul.f32 %v1075_v18, %v53_v4  ;;  %v1060_v4 = vld [vmem:[%s1364_s11] sm:$0xff]  }
 0x146   :  { %v69_v20 = vpack.c.bf16 %v68_v19, %v68_v19  ;;  %v1064_v19 = vld [vmem:[%s1358_s5 + $0x10] sm:$0xff]  }
 0x148   :  { %962 = vmatmul.mubr.msk.bf16.vlgmr.msra.gmra.mrb[0].mxu0 %vm47_vm0, %v69_v20  ;;  %v1065_v20 = vld [vmem:[%s1358_s5 + $0x18] sm:$0xff]  }
 0x149   :  { %977 = vmatprep.mubr.msk.bf16.mxu0 %vm1105_vm1, %v1104_v8  ;;  %974 = vmatpush3.bf16.msra.mxu0 %v1054_v24  ;;  %v495_v24 = vpop.permute.xlu1 %494 }
 0x14a   :  { %975 = vmatprep.subr.bf16.mxu0 %v1104_v8 }
 0x14d   :  { %976 = vmatpush3.bf16.msra.mxu0 %v1055_v33 }
 0x14e   :  { %989 = vmatprep.subr.bf16.mxu0 %v1104_v8 }
 0x21b   :  { %v122_v27 = vpop.f32.mrb[0].mxu0 }
 0x21c   :  { %v123_v28 = vadd.f32 %v859_v26, %v122_v27  ;;  %v963_v29 = vpop.f32.mrb[1].mxu0 }
 0x21d   :  { %v125_v30 = vpop.f32.mrb[2].mxu0 }
 0x21e   :  { %v128_v31 = vpack.c.bf16 %v123_v28, %v123_v28  ;;  %v964_v32 = vpop.f32.mrb[3].mxu0 }
 0x220   :  { %970 = vmatmul.mubr.msk.bf16.vlgmr.msra.gmra.mrb[0].mxu1 %vm155_vm4, %v128_v31 }
 0x221   :  { %985 = vmatprep.mubr.msk.bf16.mxu1 %vm1105_vm1, %v1104_v8  ;;  %982 = vmatpush3.bf16.msra.mxu1 %v1058_v45 }
 0x222   :  { %983 = vmatprep.subr.bf16.mxu1 %v1104_v8 }
 0x225   :  { %984 = vmatpush3.bf16.msra.mxu1 %v1059_v46 }
 0x226   :  { %997 = vmatprep.subr.bf16.mxu1 %v1104_v8 }
 0x2f3   :  { %v193_v35 = vpop.f32.mrb[0].mxu1 }
 0x2f4   :  { %v194_v36 = vadd.f32 %v193_v35, %v141_v34  ;;  %v971_v37 = vpop.f32.mrb[1].mxu1  ;;  %v1066_v35 = vld [vmem:[%s1362_s9 + $0x10] sm:$0xff]  }
 0x2f5   :  { %v196_v38 = vpop.f32.mrb[2].mxu1  ;;  %v1067_v37 = vld [vmem:[%s1362_s9 + $0x18] sm:$0xff]  }
 0x2f6   :  { %v199_v39 = vsub.f32 %v123_v28, %v194_v36  ;;  %v972_v40 = vpop.f32.mrb[3].mxu1  ;;  %v344_v44 = vpack.c.bf16 %v194_v36, %v194_v36 }
 0x2f7   :  { %v1069_v40 = vld [vmem:[%s1360_s7 + $0x18] sm:$0xff]  }
 0x2f8   :  { %v200_v42 = vpack.c.bf16 %v199_v39, %v199_v39 }
 0x2fa   :  { %978 = vmatmul.mubr.msk.bf16.vlgmr.msra.gmra.mrb[4].mxu0 %vm155_vm4, %v200_v42 }
 0x2fb   :  { %990 = vmatpush3.bf16.msra.mxu0 %v1056_v41  ;;  %993 = vmatprep.mubr.msk.bf16.mxu0 %vm1105_vm1, %v1104_v8  ;;  %v896_v41 = vld [vmem:[%s1359_s6 + $0x1] ss:$0 sm:$0xff] }
 0x2fc   :  { %991 = vmatprep.subr.bf16.mxu0 %v1104_v8 }
 0x2ff   :  { %992 = vmatpush3.bf16.msra.mxu0 %v1057_v43 }
 0x300   :  { %1005 = vmatprep.subr.bf16.mxu0 %v1104_v8 }
 0x302   :  { %994 = vmatmul.mubr.msk.bf16.vlgmr.msra.gmra.mrb[8].mxu0 %vm155_vm4, %v344_v44 }
 0x303   :  { %1009 = vmatprep.mubr.msk.bf16.mxu0 %vm1105_vm1, %v1104_v8  ;;  %1006 = vmatpush3.bf16.msra.mxu0 %v1061_v47 }
 0x304   :  { %1007 = vmatprep.subr.bf16.mxu0 %v1104_v8 }
 0x307   :  { %1008 = vmatpush3.bf16.msra.mxu0 %v1063_v7 }
 0x308   :  { %1021 = vmatprep.subr.bf16.mxu0 %v1104_v8 }
 0x3cd   :  { %v261_v49 = vpop.f32.mrb[4].mxu0 }
 0x3ce   :  { %v262_v50 = vadd.f32 %v866_v48, %v261_v49  ;;  %v979_v51 = vpop.f32.mrb[5].mxu0  ;;  %v881_v48 = vld [vmem:[%s1365_s12] ss:$0 sm:$0xff] }
 0x3cf   :  { %v264_v52 = vpop.f32.mrb[6].mxu0 }
 0x3d0   :  { %v267_v53 = vmul.f32 %v262_v50, %v262_v50  ;;  %v980_v54 = vpop.f32.mrb[7].mxu0 }
 0x3d2   :  { %v268_v55 = vmul.f32 %v267_v53, %v262_v50 }
 0x3d4   :  { %v269_v56 = vmul.f32 0.044715, %v268_v55 }
 0x3d5   :  { %v405_v57 = vpop.f32.mrb[8].mxu0 }
 0x3d6   :  { %v270_v58 = vadd.f32 %v269_v56, %v262_v50  ;;  %v995_v59 = vpop.f32.mrb[9].mxu0  ;;  %v406_v22 = vadd.f32 %v874_v21, %v405_v57 }
 0x3d7   :  { %v408_v60 = vpop.f32.mrb[10].mxu0 }
 0x3d8   :  { %v271_v61 = vmul.f32 0.7978846, %v270_v58  ;;  %v996_v62 = vpop.f32.mrb[11].mxu0 }
 0x3da   :  { %1076 = vtanh.f32 %v271_v61 }
 0x3e4   :  { %v1077_v63 = vpop.eup %1076 }
 0x3e5   :  { %v273_v0 = vadd.f32 1.0, %v1077_v63  ;;  %v1070_v63 = vld [vmem:[%s1364_s11 + $0x10] sm:$0xff]  }
 0x3e7   :  { %v274_v1 = vmul.f32 0.5, %v273_v0 }
 0x3e9   :  { %v275_v2 = vmul.f32 %v274_v1, %v262_v50  ;;  %v1071_v1 = vld [vmem:[%s1364_s11 + $0x18] sm:$0xff]  }
 0x3eb   :  { %v276_v5 = vpack.c.bf16 %v275_v2, %v275_v2  ;;  %v905_v2 = vld [vmem:[%s1361_s8 + $0x1] ss:$0 sm:$0xff]  ;;  %s1107_s8 = smov [#allocation2]  }
 0x3ec   :  { %s851_s22 = sshll.u32 %s1107_s8, 4  ;;  %s852_s22 = int_to_ptr.vmem [resolvable:$true] %s851_s22 }
 0x3ed   :  { %986 = vmatmul.mubr.msk.bf16.vlgmr.msra.gmra.mrb[4].mxu1 %vm155_vm4, %v276_v5  ;;  %p1085_p1 = scmp.lt.s32.totalorder %s852_s22, %s852_s22 }
 0x3ee   :  { %998 = vmatpush3.bf16.msra.mxu1 %v1060_v4  ;;  %1001 = vmatprep.mubr.msk.bf16.mxu1 %vm1105_vm1, %v1104_v8 }
 0x3ef   :  { %999 = vmatprep.subr.bf16.mxu1 %v1104_v8 }
 0x3f2   :  { %1000 = vmatpush3.bf16.msra.mxu1 %v1062_v6 }
 0x3f3   :  { %1013 = vmatprep.subr.bf16.mxu1 %v1104_v8 }
 0x4c0   :  { %v337_v10 = vpop.f32.mrb[4].mxu1 }
 0x4c1   :  { %v338_v11 = vadd.f32 %v870_v9, %v337_v10  ;;  %v987_v12 = vpop.f32.mrb[5].mxu1 }
 0x4c2   :  { %v340_v13 = vpop.f32.mrb[6].mxu1 }
 0x4c3   :  { %v343_v14 = vsub.f32 %v199_v39, %v338_v11  ;;  %v411_v15 = vpack.c.bf16 %v338_v11, %v338_v11  ;;  %v988_v16 = vpop.f32.mrb[7].mxu1  ;;  %v1068_v39 = vld [vmem:[%s1360_s7 + $0x10] sm:$0xff]   ;;  %v926_v13 = vld [vmem:[%s1365_s12 + $0x1] ss:$0 sm:$0xff] }
 0x4c5   :  { %v480_v18 = vpack.c.bf16 %v343_v14, %v343_v14  ;;  %1002 = vmatmul.mubr.msk.bf16.vlgmr.msra.gmra.mrb[8].mxu1 %vm155_vm4, %v411_v15 }
 0x4c6   :  { %1017 = vmatprep.mubr.msk.bf16.mxu1 %vm1105_vm1, %v1104_v8  ;;  %1014 = vmatpush3.bf16.msra.mxu1 %v1064_v19 }
 0x4c7   :  { %1010 = vmatmul.mubr.msk.bf16.vlgmr.msra.gmra.mrb[12].mxu0 %vm155_vm4, %v480_v18  ;;  %1015 = vmatprep.subr.bf16.mxu1 %v1104_v8 }
 0x4c8   :  { %1025 = vmatprep.mubr.msk.bf16.mxu0 %vm1105_vm1, %v1104_v8  ;;  %1022 = vmatpush3.bf16.msra.mxu0 %v1068_v39 }
 0x4c9   :  { %1023 = vmatprep.subr.bf16.mxu0 %v1104_v8 }
 0x4ca   :  { %1016 = vmatpush3.bf16.msra.mxu1 %v1065_v20 }
 0x4cb   :  { %1029 = vmatprep.subr.bf16.mxu1 %v1104_v8 }
 0x4cc   :  { %1024 = vmatpush3.bf16.msra.mxu0 %v1069_v40 }
 0x4cd   :  { %1037 = vmatprep.subr.bf16.mxu0 %v1104_v8 }
 0x598   :  { %v465_v23 = vpop.f32.mrb[8].mxu1 }
 0x599   :  { %v471_v25 = vadd.f32 %v465_v23, %v406_v22  ;;  %v1003_v26 = vpop.f32.mrb[9].mxu1 }
 0x59a   :  { %v468_v27 = vpop.f32.mrb[10].mxu1  ;;  %v546_v28 = vpop.f32.mrb[12].mxu0 }
 0x59b   :  { %v547_v29 = vadd.f32 %v546_v28, %v495_v24  ;;  %v1004_v30 = vpop.f32.mrb[11].mxu1  ;;  %v1011_v31 = vpop.f32.mrb[13].mxu0  ;;  %v479_v51 = vadd.f32 %v881_v48, %v471_v25 }
 0x59c   :  { %v549_v32 = vpop.f32.mrb[14].mxu0 }
 0x59d   :  { %v552_v33 = vsub.f32 %v343_v14, %v547_v29  ;;  %v1012_v34 = vpop.f32.mrb[15].mxu0  ;;  %v700_v38 = vpack.c.bf16 %v547_v29, %v547_v29 }
 0x59f   :  { %v553_v36 = vpack.c.bf16 %v552_v33, %v552_v33 }
 0x5a1   :  { %1018 = vmatmul.mubr.msk.bf16.vlgmr.msra.gmra.mrb[12].mxu1 %vm155_vm4, %v553_v36 }
 0x5a2   :  { %1030 = vmatpush3.bf16.msra.mxu1 %v1066_v35  ;;  %1033 = vmatprep.mubr.msk.bf16.mxu1 %vm1105_vm1, %v1104_v8 }
 0x5a3   :  { %1031 = vmatprep.subr.bf16.mxu1 %v1104_v8 }
 0x5a6   :  { %1032 = vmatpush3.bf16.msra.mxu1 %v1067_v37 }
 0x5a9   :  { %1034 = vmatmul.mubr.msk.bf16.vlgmr.msra.gmra.mrb[16].mxu1 %vm155_vm4, %v700_v38 }
 0x674   :  { %v616_v42 = vpop.f32.mrb[12].mxu1 }
 0x675   :  { %v617_v43 = vadd.f32 %v896_v41, %v616_v42  ;;  %v1019_v44 = vpop.f32.mrb[13].mxu1 }
 0x676   :  { %v619_v45 = vpop.f32.mrb[14].mxu1 }
 0x677   :  { %v622_v46 = vmul.f32 %v617_v43, %v617_v43  ;;  %v1020_v47 = vpop.f32.mrb[15].mxu1 }
 0x679   :  { %v623_v49 = vmul.f32 %v622_v46, %v617_v43 }
 0x67b   :  { %v624_v50 = vmul.f32 0.044715, %v623_v49 }
 0x67c   :  { %v755_v52 = vpop.f32.mrb[16].mxu1 }
 0x67d   :  { %v625_v53 = vadd.f32 %v624_v50, %v617_v43  ;;  %v761_v54 = vadd.f32 %v755_v52, %v479_v51  ;;  %v1035_v55 = vpop.f32.mrb[17].mxu1 }
 0x67e   :  { %v758_v56 = vpop.f32.mrb[18].mxu1 }
 0x67f   :  { %v626_v57 = vmul.f32 0.7978846, %v625_v53  ;;  %v1036_v58 = vpop.f32.mrb[19].mxu1 }
 0x681   :  { %1078 = vtanh.f32 %v626_v57 }
 0x68b   :  { %v1079_v59 = vpop.eup %1078 }
 0x68c   :  { %v628_v60 = vadd.f32 1.0, %v1079_v59 }
 0x68e   :  { %v629_v61 = vmul.f32 0.5, %v628_v60 }
 0x690   :  { %v630_v62 = vmul.f32 %v629_v61, %v617_v43 }
 0x692   :  { %v631_v0 = vpack.c.bf16 %v630_v62, %v630_v62 }
 0x694   :  { %1026 = vmatmul.mubr.msk.bf16.vlgmr.msra.gmra.mrb[16].mxu0 %vm155_vm4, %v631_v0 }
 0x695   :  { %1038 = vmatpush3.bf16.msra.mxu0 %v1070_v63  ;;  %1041 = vmatprep.mubr.msk.bf16.mxu0 %vm1105_vm1, %v1104_v8 }
 0x696   :  { %1039 = vmatprep.subr.bf16.mxu0 %v1104_v8  ;;  %v917_v8 = vld [vmem:[%s1363_s10 + $0x1] ss:$0 sm:$0xff]  ;;  %s1080_s10 = scalar_lea.vmem %s852_s22, 128 }
 0x697   :  { %v770_v11 = vadd.f32 %v917_v8, %v761_v54  ;;  %p1081_p0 = scmp.ne.s32.totalorder %s852_s22, %s1080_s10  ;;  %p1086_p2 = scmp.lt.s32.totalorder %s1080_s10, %s1080_s10 }
 0x699   :  { %1040 = vmatpush3.bf16.msra.mxu0 %v1071_v1  ;;  %p1087_p3 = por %p1086_p2, %p1085_p1 }
 0x69b   :  { %p1088_p4 = pnand %p1087_p3, %p1081_p0 }
 0x767   :  { %v694_v4 = vpop.f32.mrb[16].mxu0 }
 0x768   :  { %v695_v5 = vadd.f32 %v905_v2, %v694_v4  ;;  %v1027_v6 = vpop.f32.mrb[17].mxu0 }
 0x769   :  { %v697_v7 = vpop.f32.mrb[18].mxu0 }
 0x76a   :  { %v771_v9 = vpack.c.bf16 %v695_v5, %v695_v5  ;;  %v1028_v10 = vpop.f32.mrb[19].mxu0 }
 0x76c   :  { %1042 = vmatmul.mubr.msk.bf16.vlgmr.msra.gmra.mrb[20].mxu0 %vm155_vm4, %v771_v9 }
 0x83f   :  { %v826_v12 = vpop.f32.mrb[20].mxu0 }
 0x840   :  { %v832_v14 = vadd.f32 %v826_v12, %v770_v11  ;;  %v1043_v15 = vpop.f32.mrb[21].mxu0 }
 0x841   :  { %v829_v16 = vpop.f32.mrb[22].mxu0 }
 0x842   :  { %v841_v18 = vadd.f32 %v926_v13, %v832_v14  ;;  %v1044_v19 = vpop.f32.mrb[23].mxu0 }
 0x844   :  { %v842_v20 = vmul.f32 %v841_v18, %v1200_v17 }
 0x846   :  { %v843_v21 = vadd.f32 %v842_v20, %v1182_v3 }
 0x848   :  { %844 = vst [vmem:[#allocation2] sm:$0xff] %v843_v21 }
 0x849   :  { %1091 = shalt.err (!%p1088_p4)
}
 0x84a   :  { %s1092_s23 = scalar_lea.hbm %s1366_s13, 128 }
 0x84b   :  { %p1093_p5 = scmp.ne.s32.totalorder %s1366_s13, %s1092_s23  ;;  %p1096_p6 = scmp.lt.u32.totalorder %s1092_s23, %s1366_s13 }
 0x84d   :  { %p1098_p7 = pnand %p1096_p6, %p1093_p5 }
 0x84f   :  { %1101 = shalt.err (!%p1098_p7)
}
 0x850   :  { %854 = dma.vmem_to_hbm [thread:$0]  %s852_s22, 128, %s1366_s13, [#allocation3]  }
 0x851   :  { %1102 = dma.done.wait [#allocation3], 128  }
 0x852   :  { %1103 = vsyncadd [#allocation3], 4294967168 }
 0x853   :  { %858 = vsyncpa [#allocation3], 1 }

</bundles_post_ra>
